<compile_context>
chip_gen: v5e
topology: v5e:2x2
jax: 0.10.0
libtpu: 0.0.40
codegen_flags: <defaults>
</compile_context>

<pallas_src>
import functools

import jax
import jax.numpy as jnp
from jax.experimental import pallas as pl
from jax.experimental.pallas import tpu as pltpu


def _alibi_add_kernel(x_ref, o_ref):
    # x_ref / o_ref: (row_tile, S2) — batch dim squeezed away, last dim kept
    # full so stores stay lane-dense for realistic (>=128) sequence lengths.
    # bias[i, j] = j  (== alibi[:, :seq_len][i, j] in the PyTorch module).
    bias = jax.lax.broadcasted_iota(jnp.int32, x_ref.shape, dimension=1)
    o_ref[...] = x_ref[...] + bias.astype(x_ref.dtype)


def _pick_row_tile(s1, s2, itemsize, target_tile_bytes=2 << 20, max_rows=1024):
    """Largest 8-aligned row tile with a modest per-tile byte budget.

    ~2 MiB per tile -> ~8 MiB resident with double-buffered in+out, which fits
    the default scoped-VMEM limit on v5e/v6e (128 MiB phys) and v7x (64 MiB).
    """
    rows_by_bytes = max(1, target_tile_bytes // max(1, s2 * itemsize))
    rows = min(s1, max_rows, rows_by_bytes)
    if rows >= s1:
        return s1                       # full second-to-last dim is always legal
    return max(8, (rows // 8) * 8)      # otherwise must be a multiple of 8


@functools.partial(jax.jit, static_argnums=(1, 2), donate_argnums=(0,))
def alibi_position_encoding(x, d_model, max_len=5000):
    """x: (B, S, S) with S == d_model and S <= max_len.

    Returns x + alibi[:, :S][None], i.e. x[b, i, j] + j, same dtype as x.
    """
    B, s1, s2 = x.shape
    seq_len = s1
    if seq_len > max_len:
        raise ValueError(f"seq_len {seq_len} exceeds max_len {max_len}")
    if s1 != d_model or s2 != seq_len:
        raise ValueError(
            "PyTorch broadcast requires x.shape == (B, d_model, seq_len) with "
            f"seq_len == x.shape[1]; got {x.shape} with d_model={d_model}"
        )

    row_tile = _pick_row_tile(s1, s2, x.dtype.itemsize)
    grid = (B, pl.cdiv(s1, row_tile))

    # Same tiling for input and output: (1-squeezed, row_tile, full S2).
    block = pl.BlockSpec((pl.Squeezed(), row_tile, s2), lambda b, i: (b, i, 0))

    return pl.pallas_call(
        _alibi_add_kernel,
        out_shape=jax.ShapeDtypeStruct(x.shape, x.dtype),
        grid=grid,
        in_specs=[block],
        out_specs=block,
        # Pure elementwise in-place add: reuse x's HBM buffer (x is donated
        # at the jit boundary above), skipping a second (B,S,S) allocation.
        input_output_aliases={0: 0},
        compiler_params=pltpu.CompilerParams(
            # 2-D parallel grid so both v7x TensorCores get work even for B<=2.
            dimension_semantics=("parallel", "parallel"),
        ),
    )(x)


if __name__ == "__main__":
    B = 2
    S = 32            # seq_len == d_model required by the PyTorch broadcast
    d_model = 32
    max_len = 128

    key = jax.random.PRNGKey(0)
    x = jax.random.normal(key, (B, S, S), dtype=jnp.float32)
    x_shape, x_dtype = x.shape, x.dtype

    # Reference (plain JAX mirror of the PyTorch forward) — computed BEFORE the
    # kernel call because x is donated to the kernel.
    alibi_table = jnp.broadcast_to(
        jnp.arange(max_len, dtype=jnp.float32)[None, :], (d_model, max_len)
    )
    ref = jax.block_until_ready(x + alibi_table[:, :S][None, :, :])

    out = alibi_position_encoding(x, d_model, max_len)
    out = jax.block_until_ready(out)

    assert out.shape == x_shape and out.dtype == x_dtype
    assert jnp.allclose(out, ref), "mismatch vs reference"

    print("KERNEL_OK")
</pallas_src>

<mosaic_0001>
module attributes {stable_mosaic.version = 11 : i64} {
  func.func @_alibi_add_kernel(%arg0: i32, %arg1: i32, %arg2: memref<1x32x32xf32, #tpu.memory_space<vmem>>, %arg3: memref<1x32x32xf32, #tpu.memory_space<vmem>>) attributes {dimension_semantics = [#tpu.dimension_semantics<parallel>, #tpu.dimension_semantics<parallel>], iteration_bounds = array<i64: 2, 1>, scalar_prefetch = 0 : i64, scratch_operands = 0 : i64, tpu.core_type = #tpu.core_type<tc>, window_params = [{transform_indices = @transform_0, window_bounds = array<i64: 1, 32, 32>}, {transform_indices = @transform_1, window_bounds = array<i64: 1, 32, 32>}]} {
    %0 = tpu.iota {dimensions = array<i32: 1>} : vector<32x32xi32>
    %c0 = arith.constant 0 : index
    %c0_0 = arith.constant 0 : index
    %c0_1 = arith.constant 0 : index
    %1 = vector.load %arg2[%c0, %c0_0, %c0_1] : memref<1x32x32xf32, #tpu.memory_space<vmem>>, vector<1x32x32xf32>
    %2 = vector.shape_cast %1 : vector<1x32x32xf32> to vector<32x32xf32>
    %3 = arith.sitofp %0 : vector<32x32xi32> to vector<32x32xf32>
    %4 = arith.addf %2, %3 : vector<32x32xf32>
    %c0_2 = arith.constant 0 : index
    %c0_3 = arith.constant 0 : index
    %c0_4 = arith.constant 0 : index
    %5 = vector.load %arg3[%c0_2, %c0_3, %c0_4] : memref<1x32x32xf32, #tpu.memory_space<vmem>>, vector<1x32x32xf32>
    %6 = vector.shape_cast %5 : vector<1x32x32xf32> to vector<32x32xf32>
    %7 = vector.shape_cast %4 : vector<32x32xf32> to vector<1x32x32xf32>
    tpu.vector_store %arg3[%c0_2, %c0_3, %c0_4], %7 {strides = array<i32>} : memref<1x32x32xf32, #tpu.memory_space<vmem>>, vector<1x32x32xf32>,
    return
  }
  func.func @transform_0(%arg0: i32, %arg1: i32) -> (i32, i32, i32) {
    %c0_i32 = arith.constant 0 : i32
    %c0_i32_0 = arith.constant 0 : i32
    return %arg0, %arg1, %c0_i32 : i32, i32, i32
  }
  func.func @transform_1(%arg0: i32, %arg1: i32) -> (i32, i32, i32) {
    %c0_i32 = arith.constant 0 : i32
    %c0_i32_0 = arith.constant 0 : i32
    return %arg0, %arg1, %c0_i32 : i32, i32, i32
  }
}

</mosaic_0001>

<bundles_post_ra>
// kernel: alibi_position_encoding.1
= control target key start
LH: loop header
LB: loop body
LE: loop exit
PB: predicated region body
PF: predicated region fallthrough
CT: control target
= control target key end

     0   :  { %6 = vsyncpa [#allocation3], 0  ;;  %s613_s0 = inlined_call_operand.hbm [shape: f32[2,32,32], index: 0, kind: input, shape index: {}, may-alias: {0,1}]   ;;  %s614_s1 = inlined_call_operand.hbm [shape: f32[2,32,32], index: 1, kind: output, shape index: {}, may-alias: {0,1}]  }
   0x1   :  { %8 = vsyncpa [#allocation3 + $0x1], 0 }
   0x2   :  { %9 = vsyncpa [#allocation4], 0 }
   0x3   :  { %11 = vsyncpa [#allocation4 + $0x1], 0  ;;  %s489_s6 = smov 0   ;;  %s491_s7 = smov 0  }
   0x4   :  { %s493_s8 = smov 0   ;;  %s495_s9 = smov 0  }
   0x5   :  { %s497_s10 = smov 0   ;;  %s499_s11 = smov 0  }
   0x6 LB: > { %s278_s12 = sadd.s32 4294967295, %s473_s11   ;;  %s279_s13 = sadd.s32 4294967294, %s473_s11   ;;  %s473_s11 = sphi %s499_s11, %s17_s11   ;;  %s469_s10 = sphi %s497_s10, %s623_s10   ;;  %s465_s9 = sphi %s495_s9, %s622_s9   ;;  %s461_s8 = sphi %s493_s8, %s621_s8   ;;  %s457_s7 = sphi %s491_s7, %s620_s7   ;;  %s453_s6 = sphi %s489_s6, %s619_s6  }
   0x7   : > { %s29_s14 = sadd.s32 1, %s469_s10  ;;  %s38_s15 = sadd.s32 1, %s461_s8 }
   0x8   : > { %p31_p0 = scmp.ge.s32.totalorder %s29_s14, 2  ;;  %p45_p1 = scmp.ne.s32.totalorder %s461_s8, %s457_s7 }
   0x9   : > { %p46_p2 = scmp.eq.s32.totalorder %s473_s11, 0  ;;  %p51_p3 = scmp.ne.s32.totalorder %s457_s7, %s453_s6 }
   0xa   : > { %s625_s14 = smov (%p31_p0, %s29_s14), 0  ;;  %p52_p5 = scmp.eq.s32.totalorder %s278_s12, 0 }
   0xb   : > { %p530_p4 = por %p46_p2, %p45_p1  ;;  %s33_s17 = ssub.s32 %s469_s10, %s625_s14 }
   0xc   : > { %p77_p6 = scmp.eq.s32.totalorder %s278_s12, 1  ;;  %p36_p7 = scmp.eq.s32.totalorder %s33_s17, 0 }
   0xd   : > { %p536_p8 = por %p52_p5, %p51_p3  ;;  %p83_p10 = scmp.eq.s32.totalorder %s279_s13, 1 }
   0xe   : > { %p540_p9 = por %p77_p6, %p45_p1  ;;  %p281_p12 = scmp.ge.s32.totalorder %s473_s11, 2 }
   0xf   : > { %s545_s20 = scalar_select %p36_p7, %s461_s8, %s38_s15  }
  0x10   : > { %p547_p11 = por %p83_p10, %p51_p3  ;;  %p307_p13 = scmp.lt.s32.totalorder %s473_s11, 2 }
  0x11   : > { %s103_s22 = sand.u32 1, %s461_s8   ;;  %s293_s24 = sshll.u32 %s469_s10, 5 }
  0x12   : > { %s282_s23 = sshll.u32 %s103_s22, 5  ;;  %s114_s27 = scalar_lea.hbm %s613_s0, %s293_s24 }
  0x13   : > { %s107_s28 = scalar_lea.vmem [#allocation2], %s282_s23  ;;  %s115_s30 = sshll.u32 %s114_s27, 4  ;;  %s116_s30 = int_to_ptr.hbm [resolvable:$true] %s115_s30 }
  0x14   : > { %s117_s29 = sshll.u32 %s107_s28, 4  ;;  %p300_p0 = pnand %p307_p13, %p530_p4  ;;  %s118_s29 = int_to_ptr.vmem [resolvable:$true] %s117_s29 }
  0x15   : > { %p285_p1 = scmp.ge.s32.totalorder %s473_s11, 1  ;;  %s104_s2 = scalar_lea.sflag [#allocation3], %s103_s22 }
  0x16   : > { %s475_s3 = smov 128   ;;  %s476_s4 = smov 8  }
  0x17   : > { %302 = dma.hbm_to_vmem [thread:$0]  (!%p300_p0), %s116_s30, 512, %s118_s29, %s104_s2, %s475_s3, %s475_s3, %s476_s4  }
  0x18   : > { %p125_p2 = scmp.lt.s32.totalorder %s473_s11, 3 }
  0x1a   : > { %p126_p3 = pnand %p285_p1, %p125_p2 }
  0x1b   : > { %s563_s5 = sand.u32 (!%p126_p3), 1, %s457_s7  }
  0x1c   : > { %129 = sbr.rel (%p126_p3) target bundleno = 50 (0x32), region = 24  ;;  %s286_s12 = sshll.u32 (!%p126_p3), %s563_s5, 5 }
  0x1d   : > { %s132_s13 = scalar_lea.sflag (!%p126_p3), [#allocation3], %s563_s5  ;;  %s135_s15 = scalar_lea.vmem (!%p126_p3), [#allocation2], %s286_s12 }
  0x21   : > { %444 = dma.done.wait (%p536_p8), %s132_s13, 512  }
  0x22   : > { %446 = vsyncadd (%p536_p8), %s132_s13, 4294966784  ;;  %v157_v0 = vlaneseq  ;;  %s294_s16 = sshll.u32 %s465_s9, 5  ;;  %v159_v3 = vld [vmem:[%s135_s15] sm:$0xff]  ;;  %vm168_vm0 = vcmask 261120   ;;  %s154_s24 = scalar_lea.vmem [#allocation5], %s286_s12  ;;  %v160_v4 = vld [vmem:[%s135_s15 + $0x8] sm:$0xff] }
  0x23   : > { %s187_s23 = scalar_lea.hbm %s614_s1, %s294_s16  ;;  %s188_s25 = sshll.u32 %s154_s24, 4  ;;  %v161_v5 = vld [vmem:[%s135_s15 + $0x10] sm:$0xff]  ;;  %v162_v9 = vld [vmem:[%s135_s15 + $0x18] sm:$0xff]  ;;  %s189_s25 = int_to_ptr.vmem [resolvable:$true] %s188_s25 }
  0x24   : > { %v158_v1 = vand.u32 127, %v157_v0  ;;  %s190_s18 = sshll.u32 %s187_s23, 4  ;;  %s174_s9 = scalar_lea.sflag [#allocation4], %s563_s5  ;;  %s191_s18 = int_to_ptr.hbm [resolvable:$true] %s190_s18 }
  0x25   : > { %s405_s26 = sshra.s32 %s191_s18, 4  ;;  %s411_s30 = scalar_lea.hbm %s614_s1, 64  ;;  %s406_s26 = int_to_ptr.hbm [resolvable:$true] %s405_s26 }
  0x26   : > { %v163_v2 = vcvt.s32.f32 %v158_v1  ;;  %s407_s27 = scalar_lea.hbm %s406_s26, 32  ;;  %p412_p7 = scmp.lt.s32.totalorder %s406_s26, %s614_s1 }
  0x27   : > { %p408_p4 = scmp.ne.s32.totalorder %s406_s26, %s407_s27  ;;  %p413_p8 = scmp.lt.s32.totalorder %s411_s30, %s407_s27 }
  0x28   : > { %v164_v6 = vadd.f32 %v163_v2, %v159_v3  ;;  %v165_v7 = vadd.f32 %v163_v2, %v160_v4  ;;  %v166_v8 = vadd.f32 %v163_v2, %v161_v5  ;;  %v167_v10 = vadd.f32 %v163_v2, %v162_v9 }
  0x29   : > { %p409_p5 = pnand %p408_p4, %p540_p9  ;;  %p414_p10 = por %p413_p8, %p412_p7 }
  0x2a   : > { %169 = vst.msk [vmem:[%s154_s24] sm:$0xff] %vm168_vm0, %v164_v6 }
  0x2b   : > { %170 = vst.msk [vmem:[%s154_s24 + $0x8] sm:$0xff] %vm168_vm0, %v165_v7  ;;  %p410_p6 = pneg %p409_p5 }
  0x2c   : > { %171 = vst.msk [vmem:[%s154_s24 + $0x10] sm:$0xff] %vm168_vm0, %v166_v8 }
  0x2d   : > { %172 = vst.msk [vmem:[%s154_s24 + $0x18] sm:$0xff] %vm168_vm0, %v167_v10  ;;  %p415_p13 = pnand %p414_p10, %p410_p6 }
  0x2f   : > { %418 = shalt.err (!%p415_p13)
}
  0x30   : > { %s477_s4 = smov 128   ;;  %s478_s5 = smov 8  }
  0x31   : > { %297 = dma.vmem_to_hbm [thread:$0]  (%p540_p9), %s189_s25, 512, %s191_s18, %s174_s9, %s477_s4, %s477_s4, %s478_s5  }
  0x32 PF: > { %s205_s12 = sand.u32 1, %s453_s6   ;;  %p304_p0 = pnand %p281_p12, %p547_p11 }
  0x33   : > { %s206_s13 = scalar_lea.sflag [#allocation4], %s205_s12 }
  0x34   : > { %p305_p1 = pneg %p304_p0 }
  0x36   : > { %448 = dma.done.wait (%p305_p1), %s206_s13, 512  }
  0x37   : > { %450 = vsyncadd (%p305_p1), %s206_s13, 4294966784  ;;  %s17_s11 = sadd.s32 1, %s473_s11   ;;  %s619_s6 = smov %s457_s7 }
  0x38   : > { %p14_p2 = scmp.ge.s32.totalorder %s17_s11, 4   ;;  %s620_s7 = smov %s461_s8 }
  0x39   : > { %s621_s8 = smov %s545_s20  ;;  %s622_s9 = smov %s469_s10 }
  0x3a   : > { %s623_s10 = smov %s625_s14  ;;  %16 = sbr.rel (!%p14_p2) target bundleno = 6 (0x6), region = 69 }
  0x3f   :  { %212 = vsyncpa [#allocation3], 1 }
  0x40   :  { %214 = vsyncpa [#allocation3 + $0x1], 1 }
  0x41   :  { %215 = vsyncpa [#allocation4], 1 }
  0x42   :  { %217 = vsyncpa [#allocation4 + $0x1], 1 }

</bundles_post_ra>
